<compile_context>
chip_gen: v6e
topology: v6e:2x2x1
jax: 0.10.0
libtpu: 0.0.40
codegen_flags: <defaults>
</compile_context>

<pallas_src>
import functools

import jax
import jax.numpy as jnp
from jax.experimental import pallas as pl
from jax.experimental.pallas import tpu as pltpu


def belief_encoder_kernel(x_ref, w1_ref, b1_ref, w2_ref, b2_ref, o_ref, *, inv_s):
    """One batch tile.

    x_ref : (TB, Kp)   streamed samples, flattened (sample, feature) -> K
    w1_ref: (Kp, Hp)   first-layer weight tiled S times (sum-over-samples folded in)
    b1_ref: (1, Hp)    f32
    w2_ref: (Hp, Hp)
    b2_ref: (1, Hp)    f32
    o_ref : (TB, Hp)
    """
    # Linear 1: the sample reduction rides the MXU's K dimension; f32 accumulate.
    h = jnp.dot(x_ref[...], w1_ref[...], preferred_element_type=jnp.float32)
    # Mean scale on the f32 accumulator (not baked into the weights), bias, ReLU.
    h = jnp.maximum(h * inv_s + b1_ref[...], 0.0)
    # Linear 2: feed the MXU in the weight dtype, accumulate in f32.
    out = jnp.dot(h.astype(w2_ref.dtype), w2_ref[...],
                  preferred_element_type=jnp.float32) + b2_ref[...]
    o_ref[...] = out.astype(o_ref.dtype)


_VMEM_BUDGET = 32 * 1024 * 1024   # tile-sizing budget; safe on v7x (64 MiB physical)
_VMEM_LIMIT = 40 * 1024 * 1024    # explicit scoped-VMEM limit (> v5e's 16 MiB default)


def _round_up(x, m):
    return ((x + m - 1) // m) * m


def _choose_batch_tile(B, Kp, Hp, x_item, w_item, out_item,
                       vmem_budget_bytes=_VMEM_BUDGET):
    """Largest batch tile (multiple of 8, <= 1024) whose double-buffered streams
    plus resident weights fit the budget.  With the 2-D (TB, Kp)/(TB, Hp)
    layout this model is exact (no hidden sublane-tile padding)."""
    # Resident weights/biases (counted double-buffered to be conservative).
    weights = 2 * (Kp * Hp * w_item + Hp * 4 + Hp * Hp * w_item + Hp * 4)
    # Per batch row: double-buffered input + output streams + f32 intermediates.
    per_row = 2 * Kp * x_item + 2 * Hp * out_item + 2 * Hp * 4
    tb = min(1024, max(8, _round_up(B, 8)))
    while tb > 8 and weights + tb * per_row > vmem_budget_bytes:
        tb -= 8
    # v7x: keep >= 2 grid steps so both TensorCores get work (and DMA overlaps).
    if B >= 16:
        tb = min(tb, _round_up(-(-B // 2), 8))
    return tb


def belief_encoder(belief_samples, w1, b1, w2, b2):
    """belief_samples: (B, S, D_in); w1: (D_in, H); b1: (H,); w2: (H, H); b2: (H,).

    Weights are (in_features, out_features), i.e. PyTorch's Linear weight transposed.
    """
    B, S, D_in = belief_samples.shape
    H = w1.shape[1]
    out_dtype = jnp.result_type(belief_samples.dtype, w1.dtype)
    # bf16 inputs -> bf16 weights into the MXU (f32 accumulate); else f32.
    compute_dtype = (jnp.bfloat16 if belief_samples.dtype == jnp.bfloat16
                     else jnp.float32)

    # --- Fold the sample-mean into the first matmul's K dimension ------------
    # x2[b, s*D_in + d] = x[b, s, d];  W1_eff[s*D_in + d, h] = w1[d, h]
    #   => x2 @ W1_eff == sum_s (x[:, s] @ w1); the 1/S lands on the f32 acc.
    # TODO(synk): for very large S*D_in the tiled W1_eff should be K-tiled over
    # the grid instead of held resident; fine at production belief-VAE sizes.
    K = S * D_in
    x2 = belief_samples.reshape(B, K)
    w1_eff = jnp.tile(w1, (S, 1))                      # (K, H)

    # --- Lane-dense padding (zeros are exact) ---------------------------------
    Kp = _round_up(K, 128)
    Hp = _round_up(max(H, 128), 128)
    if Kp != K:
        x2 = jnp.pad(x2, ((0, 0), (0, Kp - K)))
        w1_eff = jnp.pad(w1_eff, ((0, Kp - K), (0, 0)))
    if Hp != H:
        w1_eff = jnp.pad(w1_eff, ((0, 0), (0, Hp - H)))
        b1 = jnp.pad(b1, (0, Hp - H))
        w2 = jnp.pad(w2, ((0, Hp - H), (0, Hp - H)))
        b2 = jnp.pad(b2, (0, Hp - H))

    w1_eff = w1_eff.astype(compute_dtype)
    w2_p = w2.astype(compute_dtype)
    b1_2d = b1.reshape(1, Hp).astype(jnp.float32)
    b2_2d = b2.reshape(1, Hp).astype(jnp.float32)

    # --- Batch tiling ---------------------------------------------------------
    x_item = x2.dtype.itemsize
    w_item = jnp.dtype(compute_dtype).itemsize
    out_item = jnp.dtype(out_dtype).itemsize
    TB = _choose_batch_tile(B, Kp, Hp, x_item, w_item, out_item)
    B_pad = _round_up(B, TB)
    if B_pad != B:
        x2 = jnp.pad(x2, ((0, B_pad - B), (0, 0)))

    flops = 2 * B_pad * (Kp * Hp + Hp * Hp)
    bytes_accessed = (x2.size * x_item
                      + w1_eff.size * w_item + w2_p.size * w_item + 2 * Hp * 4
                      + B_pad * Hp * out_item)

    kernel = functools.partial(belief_encoder_kernel, inv_s=1.0 / S)

    out = pl.pallas_call(
        kernel,
        out_shape=jax.ShapeDtypeStruct((B_pad, Hp), out_dtype),
        grid=(B_pad // TB,),
        in_specs=[
            pl.BlockSpec((TB, Kp), lambda i: (i, 0)),     # streamed input tile
            pl.BlockSpec((Kp, Hp), lambda i: (0, 0)),     # resident weights
            pl.BlockSpec((1, Hp), lambda i: (0, 0)),
            pl.BlockSpec((Hp, Hp), lambda i: (0, 0)),
            pl.BlockSpec((1, Hp), lambda i: (0, 0)),
        ],
        out_specs=pl.BlockSpec((TB, Hp), lambda i: (i, 0)),
        compiler_params=pltpu.CompilerParams(
            dimension_semantics=("parallel",),            # 2 TCs on v7x
            vmem_limit_bytes=_VMEM_LIMIT),
        cost_estimate=pl.CostEstimate(
            flops=flops, transcendentals=0, bytes_accessed=bytes_accessed),
    )(x2, w1_eff, b1_2d, w2_p, b2_2d)

    return out[:B, :H]


def init_params(key, state_dim, belief_dim, dtype=jnp.float32):
    """Synthetic init mirroring the nn.Linear shapes (weights stored as (in, out))."""
    d_in = state_dim * 2
    k1, k2, k3, k4 = jax.random.split(key, 4)
    w1 = (jax.random.normal(k1, (d_in, belief_dim), dtype) * 0.05).astype(dtype)
    b1 = (jax.random.normal(k2, (belief_dim,), dtype) * 0.05).astype(dtype)
    w2 = (jax.random.normal(k3, (belief_dim, belief_dim), dtype) * 0.05).astype(dtype)
    b2 = (jax.random.normal(k4, (belief_dim,), dtype) * 0.05).astype(dtype)
    return w1, b1, w2, b2


def belief_encoder_ref(belief_samples, w1, b1, w2, b2):
    """Pure-JAX reference matching the PyTorch forward."""
    x = belief_samples.mean(axis=1)
    h = jnp.maximum(x @ w1 + b1, 0.0)
    return h @ w2 + b2


if __name__ == "__main__":
    key = jax.random.PRNGKey(0)
    state_dim = 16      # -> input feature dim = 32
    belief_dim = 32
    batch = 8
    num_samples = 8

    kx, kp = jax.random.split(key)
    belief_samples = jax.random.normal(
        kx, (batch, num_samples, state_dim * 2), jnp.float32
    )
    w1, b1, w2, b2 = init_params(kp, state_dim, belief_dim)

    out = jax.block_until_ready(belief_encoder(belief_samples, w1, b1, w2, b2))

    ref = belief_encoder_ref(belief_samples, w1, b1, w2, b2)
    assert out.shape == (batch, belief_dim)
    assert jnp.allclose(out, ref, atol=2e-5, rtol=1e-4), "mismatch vs reference"

    print("KERNEL_OK")
</pallas_src>

<mosaic_0001>
module attributes {stable_mosaic.version = 11 : i64} {
  func.func @belief_encoder_kernel(%arg0: i32, %arg1: memref<8x256xf32, #tpu.memory_space<vmem>>, %arg2: memref<256x128xf32, #tpu.memory_space<vmem>>, %arg3: memref<1x128xf32, #tpu.memory_space<vmem>>, %arg4: memref<128x128xf32, #tpu.memory_space<vmem>>, %arg5: memref<1x128xf32, #tpu.memory_space<vmem>>, %arg6: memref<8x128xf32, #tpu.memory_space<vmem>>) attributes {dimension_semantics = [#tpu.dimension_semantics<parallel>], iteration_bounds = array<i64: 1>, scalar_prefetch = 0 : i64, scratch_operands = 0 : i64, tpu.core_type = #tpu.core_type<tc>, window_params = [{transform_indices = @transform_0, window_bounds = array<i64: 8, 256>}, {pipeline_mode = #tpu.pipeline_mode<synchronous>, transform_indices = @transform_1, window_bounds = array<i64: 256, 128>}, {pipeline_mode = #tpu.pipeline_mode<synchronous>, transform_indices = @transform_2, window_bounds = array<i64: 1, 128>}, {pipeline_mode = #tpu.pipeline_mode<synchronous>, transform_indices = @transform_3, window_bounds = array<i64: 128, 128>}, {pipeline_mode = #tpu.pipeline_mode<synchronous>, transform_indices = @transform_4, window_bounds = array<i64: 1, 128>}, {transform_indices = @transform_5, window_bounds = array<i64: 8, 128>}]} {
    %c0 = arith.constant 0 : index
    %c0_0 = arith.constant 0 : index
    %0 = vector.load %arg1[%c0, %c0_0] : memref<8x256xf32, #tpu.memory_space<vmem>>, vector<8x256xf32>
    %c0_1 = arith.constant 0 : index
    %c0_2 = arith.constant 0 : index
    %1 = vector.load %arg2[%c0_1, %c0_2] : memref<256x128xf32, #tpu.memory_space<vmem>>, vector<256x128xf32>
    %cst = arith.constant dense<0.000000e+00> : vector<8x128xf32>
    %2 = tpu.matmul %0, %1, %cst {dimension_numbers = #tpu.dot_dimension_numbers<[1], [0], [0], [1], [0, 0, 1, 1], [], []>} : vector<8x256xf32>, vector<256x128xf32>, vector<8x128xf32> -> vector<8x128xf32>
    %cst_3 = arith.constant 1.250000e-01 : f32
    %3 = vector.broadcast %cst_3 : f32 to vector<8x128xf32>
    %4 = arith.mulf %2, %3 : vector<8x128xf32>
    %c0_4 = arith.constant 0 : index
    %c0_5 = arith.constant 0 : index
    %5 = vector.load %arg3[%c0_4, %c0_5] : memref<1x128xf32, #tpu.memory_space<vmem>>, vector<1x128xf32>
    %6 = vector.broadcast %5 : vector<1x128xf32> to vector<8x128xf32>
    %7 = arith.addf %4, %6 : vector<8x128xf32>
    %cst_6 = arith.constant 0.000000e+00 : f32
    %8 = vector.broadcast %cst_6 : f32 to vector<8x128xf32>
    %9 = arith.maximumf %7, %8 : vector<8x128xf32>
    %c0_7 = arith.constant 0 : index
    %c0_8 = arith.constant 0 : index
    %10 = vector.load %arg4[%c0_7, %c0_8] : memref<128x128xf32, #tpu.memory_space<vmem>>, vector<128x128xf32>
    %cst_9 = arith.constant dense<0.000000e+00> : vector<8x128xf32>
    %11 = tpu.matmul %9, %10, %cst_9 {dimension_numbers = #tpu.dot_dimension_numbers<[1], [0], [0], [1], [0, 0, 1, 1], [], []>} : vector<8x128xf32>, vector<128x128xf32>, vector<8x128xf32> -> vector<8x128xf32>
    %c0_10 = arith.constant 0 : index
    %c0_11 = arith.constant 0 : index
    %12 = vector.load %arg5[%c0_10, %c0_11] : memref<1x128xf32, #tpu.memory_space<vmem>>, vector<1x128xf32>
    %13 = vector.broadcast %12 : vector<1x128xf32> to vector<8x128xf32>
    %14 = arith.addf %11, %13 : vector<8x128xf32>
    %c0_12 = arith.constant 0 : index
    %c0_13 = arith.constant 0 : index
    %15 = vector.load %arg6[%c0_12, %c0_13] : memref<8x128xf32, #tpu.memory_space<vmem>>, vector<8x128xf32>
    tpu.vector_store %arg6[%c0_12, %c0_13], %14 {strides = array<i32>} : memref<8x128xf32, #tpu.memory_space<vmem>>, vector<8x128xf32>,
    return
  }
  func.func @transform_0(%arg0: i32) -> (i32, i32) {
    %c0_i32 = arith.constant 0 : i32
    %c0_i32_0 = arith.constant 0 : i32
    return %arg0, %c0_i32 : i32, i32
  }
  func.func @transform_1(%arg0: i32) -> (i32, i32) {
    %c0_i32 = arith.constant 0 : i32
    %c0_i32_0 = arith.constant 0 : i32
    %c0_i32_1 = arith.constant 0 : i32
    return %c0_i32, %c0_i32_0 : i32, i32
  }
  func.func @transform_2(%arg0: i32) -> (i32, i32) {
    %c0_i32 = arith.constant 0 : i32
    %c0_i32_0 = arith.constant 0 : i32
    %c0_i32_1 = arith.constant 0 : i32
    return %c0_i32, %c0_i32_0 : i32, i32
  }
  func.func @transform_3(%arg0: i32) -> (i32, i32) {
    %c0_i32 = arith.constant 0 : i32
    %c0_i32_0 = arith.constant 0 : i32
    %c0_i32_1 = arith.constant 0 : i32
    return %c0_i32, %c0_i32_0 : i32, i32
  }
  func.func @transform_4(%arg0: i32) -> (i32, i32) {
    %c0_i32 = arith.constant 0 : i32
    %c0_i32_0 = arith.constant 0 : i32
    %c0_i32_1 = arith.constant 0 : i32
    return %c0_i32, %c0_i32_0 : i32, i32
  }
  func.func @transform_5(%arg0: i32) -> (i32, i32) {
    %c0_i32 = arith.constant 0 : i32
    %c0_i32_0 = arith.constant 0 : i32
    return %arg0, %c0_i32 : i32, i32
  }
}

</mosaic_0001>

<bundles_post_ra>
// kernel: tpu_custom_call.1
= control target key start
LH: loop header
LB: loop body
LE: loop exit
PB: predicated region body
PF: predicated region fallthrough
CT: control target
= control target key end

     0   :  { %10 = vsyncpa [#allocation3], 0  ;;  %s540_s0 = inlined_call_operand.hbm [shape: f32[8,256], index: 0, kind: input, shape index: {}]   ;;  %s541_s1 = inlined_call_operand.hbm [shape: f32[256,128], index: 1, kind: input, shape index: {}]   ;;  %s542_s2 = inlined_call_operand.vmem [shape: f32[1,128], index: 2, kind: input, shape index: {}]   ;;  %s543_s3 = inlined_call_operand.hbm [shape: f32[128,128], index: 3, kind: input, shape index: {}]   ;;  %s544_s4 = inlined_call_operand.vmem [shape: f32[1,128], index: 4, kind: input, shape index: {}]   ;;  %s545_s5 = inlined_call_operand.hbm [shape: f32[8,128], index: 5, kind: output, shape index: {}]  }
   0x1   :  { %11 = vsyncpa [#allocation6], 0 }
   0x2   :  { %12 = vsyncpa [#allocation4], 0  ;;  %s467_s18 = smov [#allocation5]  }
   0x3   :  { %s28_s19 = sshll.u32 %s467_s18, 4  ;;  %s29_s19 = int_to_ptr.vmem [resolvable:$true] %s28_s19 }
   0x4   :  { %s389_s20 = scalar_lea.vmem %s29_s19, 4096  ;;  %p394_p1 = scmp.lt.s32.totalorder %s29_s19, %s29_s19 }
   0x5   :  { %p390_p0 = scmp.ne.s32.totalorder %s29_s19, %s389_s20  ;;  %p395_p2 = scmp.lt.s32.totalorder %s389_s20, %s389_s20 }
   0x7   :  { %p396_p3 = por %p395_p2, %p394_p1 }
   0x9   :  { %p397_p4 = pnand %p396_p3, %p390_p0 }
   0xb   :  { %400 = shalt.err (!%p397_p4)
}
   0xc   :  { %s468_s21 = smov 128   ;;  %s469_s22 = smov 8  }
   0xd   :  { %34 = dma.hbm_to_vmem [thread:$0]  %s541_s1, 4096, %s29_s19, [#allocation6], %s468_s21, %s468_s21, %s469_s22  }
   0xe   :  { %s470_s25 = smov [#allocation2]   ;;  %s471_s27 = smov [#allocation7]  }
   0xf   :  { %s19_s26 = sshll.u32 %s470_s25, 4  ;;  %s42_s28 = sshll.u32 %s471_s27, 4  ;;  %s20_s26 = int_to_ptr.vmem [resolvable:$true] %s19_s26  ;;  %s43_s28 = int_to_ptr.vmem [resolvable:$true] %s42_s28 }
  0x10   :  { %s409_s29 = scalar_lea.vmem %s20_s26, 256  ;;  %p414_p6 = scmp.lt.s32.totalorder %s20_s26, %s20_s26 }
  0x11   :  { %p410_p5 = scmp.ne.s32.totalorder %s20_s26, %s409_s29  ;;  %p415_p7 = scmp.lt.s32.totalorder %s409_s29, %s409_s29 }
  0x13   :  { %p416_p8 = por %p415_p7, %p414_p6 }
  0x15   :  { %p417_p9 = pnand %p416_p8, %p410_p5 }
  0x17   :  { %420 = shalt.err (!%p417_p9)
}
  0x18   :  { %22 = dma.hbm_to_vmem [thread:$0]  %s540_s0, 256, %s20_s26, [#allocation3]  }
  0x19   :  { %s429_s7 = scalar_lea.vmem %s43_s28, 2048  ;;  %p434_p11 = scmp.lt.s32.totalorder %s43_s28, %s43_s28 }
  0x1a   :  { %p430_p10 = scmp.ne.s32.totalorder %s43_s28, %s429_s7  ;;  %p435_p12 = scmp.lt.s32.totalorder %s429_s7, %s429_s7 }
  0x1c   :  { %p436_p13 = por %p435_p12, %p434_p11 }
  0x1e   :  { %p437_p0 = pnand %p436_p13, %p430_p10 }
  0x20   :  { %440 = shalt.err (!%p437_p0)
}
  0x21   :  { %48 = dma.hbm_to_vmem [thread:$0]  %s543_s3, 2048, %s43_s28, [#allocation6], %s468_s21, %s468_s21, %s469_s22  }
  0x22   :  { %461 = dma.done.wait [#allocation3], 256  }
  0x23   :  { %462 = vsyncadd [#allocation3], 4294967040 }
  0x24   :  { %463 = dma.done.wait [#allocation6], 6144  }
  0x25   :  { %464 = vsyncadd [#allocation6], 4294961152  ;;  %v472_v0 = vmov 0.0   ;;  %v93_v1 = vld [vmem:[#allocation5 + $0xf8] sm:$0xff]  ;;  %v92_v3 = vld [vmem:[#allocation5 + $0xf0] sm:$0xff]  ;;  %vm473_vm0 = vmmov 0  }
  0x26   :  { %338 = vmatprep.subr.mxu1 %v472_v0  ;;  %v77_v2 = vld [vmem:[#allocation5 + $0x78] sm:$0xff]  ;;  %286 = vmatprep.subr.mxu0 %v93_v1  ;;  %v76_v4 = vld [vmem:[#allocation5 + $0x70] sm:$0xff]  ;;  %v91_v5 = vld [vmem:[#allocation5 + $0xe8] sm:$0xff]  ;;  %s474_s11 = smov [#allocation8]  }
  0x27   :  { %287 = vmatpush3.msra.mxu0 %v77_v2  ;;  %v75_v6 = vld [vmem:[#allocation5 + $0x68] sm:$0xff]  ;;  %v90_v7 = vld [vmem:[#allocation5 + $0xe0] sm:$0xff]  ;;  %v89_v9 = vld [vmem:[#allocation5 + $0xd8] sm:$0xff]  ;;  %370 = vmatprep.mubr.msk.f32.mxu1 %vm473_vm0, %v472_v0  ;;  %s274_s12 = sshll.u32 %s474_s11, 4  ;;  %s275_s12 = int_to_ptr.vmem [resolvable:$true] %s274_s12 }
  0x28   :  { %288 = vmatprep.subr.mxu0 %v92_v3  ;;  %v74_v8 = vld [vmem:[#allocation5 + $0x60] sm:$0xff]  ;;  %v73_v10 = vld [vmem:[#allocation5 + $0x58] sm:$0xff]  ;;  %v88_v11 = vld [vmem:[#allocation5 + $0xd0] sm:$0xff]  ;;  %s441_s13 = scalar_lea.vmem %s275_s12, 128  ;;  %p446_p2 = scmp.lt.s32.totalorder %s275_s12, %s275_s12 }
  0x29   :  { %289 = vmatpush3.msra.mxu0 %v76_v4  ;;  %v72_v12 = vld [vmem:[#allocation5 + $0x50] sm:$0xff]  ;;  %v87_v13 = vld [vmem:[#allocation5 + $0xc8] sm:$0xff]  ;;  %v61_v14 = vld [vmem:[#allocation2 + $0x8] sm:$0xff]  ;;  %p442_p1 = scmp.ne.s32.totalorder %s275_s12, %s441_s13  ;;  %p447_p3 = scmp.lt.s32.totalorder %s441_s13, %s441_s13 }
  0x2a   :  { %290 = vmatprep.subr.mxu0 %v91_v5  ;;  %v71_v15 = vld [vmem:[#allocation5 + $0x48] sm:$0xff]  ;;  %158 = vmatprep.mubr.f32.mxu0 %v61_v14  ;;  %v189_v16 = vld [vmem:[#allocation7 + $0x78] sm:$0xff]  ;;  %v188_v17 = vld [vmem:[#allocation7 + $0x70] sm:$0xff] }
  0x2b   :  { %291 = vmatpush3.msra.mxu0 %v75_v6  ;;  %v86_v18 = vld [vmem:[#allocation5 + $0xc0] sm:$0xff]  ;;  %339 = vmatpush3.msra.mxu1 %v189_v16  ;;  %v187_v20 = vld [vmem:[#allocation7 + $0x68] sm:$0xff]  ;;  %v85_v21 = vld [vmem:[#allocation5 + $0xb8] sm:$0xff]  ;;  %p448_p4 = por %p447_p3, %p446_p2 }
  0x2c   :  { %292 = vmatprep.subr.mxu0 %v90_v7  ;;  %v70_v19 = vld [vmem:[#allocation5 + $0x40] sm:$0xff]  ;;  %340 = vmatprep.subr.mxu1 %v472_v0  ;;  %v69_v22 = vld [vmem:[#allocation5 + $0x38] sm:$0xff]  ;;  %v84_v24 = vld [vmem:[#allocation5 + $0xb0] sm:$0xff] }
  0x2d   :  { %293 = vmatpush3.msra.mxu0 %v74_v8  ;;  %341 = vmatpush3.msra.mxu1 %v188_v17  ;;  %v186_v23 = vld [vmem:[#allocation7 + $0x60] sm:$0xff]  ;;  %v68_v25 = vld [vmem:[#allocation5 + $0x30] sm:$0xff]  ;;  %v185_v26 = vld [vmem:[#allocation7 + $0x58] sm:$0xff]  ;;  %p449_p5 = pnand %p448_p4, %p442_p1 }
  0x2e   :  { %294 = vmatprep.subr.mxu0 %v89_v9  ;;  %342 = vmatprep.subr.mxu1 %v472_v0  ;;  %v83_v27 = vld [vmem:[#allocation5 + $0xa8] sm:$0xff]  ;;  %v184_v29 = vld [vmem:[#allocation7 + $0x50] sm:$0xff]  ;;  %v82_v30 = vld [vmem:[#allocation5 + $0xa0] sm:$0xff] }
  0x2f   :  { %295 = vmatpush3.msra.mxu0 %v73_v10  ;;  %343 = vmatpush3.msra.mxu1 %v187_v20  ;;  %v67_v28 = vld [vmem:[#allocation5 + $0x28] sm:$0xff]  ;;  %v66_v31 = vld [vmem:[#allocation5 + $0x20] sm:$0xff]  ;;  %v81_v33 = vld [vmem:[#allocation5 + $0x98] sm:$0xff] }
  0x30   :  { %296 = vmatprep.subr.mxu0 %v88_v11  ;;  %344 = vmatprep.subr.mxu1 %v472_v0  ;;  %v183_v32 = vld [vmem:[#allocation7 + $0x48] sm:$0xff]  ;;  %v65_v34 = vld [vmem:[#allocation5 + $0x18] sm:$0xff]  ;;  %v182_v35 = vld [vmem:[#allocation7 + $0x40] sm:$0xff] }
  0x31   :  { %297 = vmatpush3.msra.mxu0 %v72_v12  ;;  %345 = vmatpush3.msra.mxu1 %v186_v23  ;;  %v80_v36 = vld [vmem:[#allocation5 + $0x90] sm:$0xff]  ;;  %v181_v38 = vld [vmem:[#allocation7 + $0x38] sm:$0xff]  ;;  %v79_v39 = vld [vmem:[#allocation5 + $0x88] sm:$0xff] }
  0x32   :  { %298 = vmatprep.subr.mxu0 %v87_v13  ;;  %346 = vmatprep.subr.mxu1 %v472_v0  ;;  %v64_v37 = vld [vmem:[#allocation5 + $0x10] sm:$0xff]  ;;  %v63_v40 = vld [vmem:[#allocation5 + $0x8] sm:$0xff]  ;;  %v78_v42 = vld [vmem:[#allocation5 + $0x80] sm:$0xff] }
  0x33   :  { %299 = vmatpush3.msra.mxu0 %v71_v15  ;;  %347 = vmatpush3.msra.mxu1 %v185_v26  ;;  %v180_v41 = vld [vmem:[#allocation7 + $0x30] sm:$0xff]  ;;  %v62_v43 = vld [vmem:[#allocation5] sm:$0xff]  ;;  %v179_v45 = vld [vmem:[#allocation7 + $0x28] sm:$0xff] }
  0x34   :  { %300 = vmatprep.subr.mxu0 %v86_v18  ;;  %348 = vmatprep.subr.mxu1 %v472_v0  ;;  %v60_v44 = vld [vmem:[#allocation2] sm:$0xff]  ;;  %v178_v46 = vld [vmem:[#allocation7 + $0x20] sm:$0xff]  ;;  %v177_v47 = vld [vmem:[#allocation7 + $0x18] sm:$0xff] }
  0x35   :  { %301 = vmatpush3.msra.mxu0 %v70_v19  ;;  %349 = vmatpush3.msra.mxu1 %v184_v29  ;;  %v176_v48 = vld [vmem:[#allocation7 + $0x10] sm:$0xff]  ;;  %v175_v49 = vld [vmem:[#allocation7 + $0x8] sm:$0xff]  ;;  %v174_v50 = vld [vmem:[#allocation7] sm:$0xff] }
  0x36   :  { %302 = vmatprep.subr.mxu0 %v85_v21  ;;  %350 = vmatprep.subr.mxu1 %v472_v0  ;;  %v284_v54 = vld [vmem:[%s542_s2] ss:$0 sm:$0xff] }
  0x37   :  { %303 = vmatpush3.msra.mxu0 %v69_v22  ;;  %351 = vmatpush3.msra.mxu1 %v183_v32  ;;  %v285_v58 = vld [vmem:[%s544_s4] ss:$0 sm:$0xff] }
  0x38   :  { %304 = vmatprep.subr.mxu0 %v84_v24  ;;  %352 = vmatprep.subr.mxu1 %v472_v0 }
  0x39   :  { %305 = vmatpush3.msra.mxu0 %v68_v25  ;;  %353 = vmatpush3.msra.mxu1 %v182_v35 }
  0x3a   :  { %306 = vmatprep.subr.mxu0 %v83_v27  ;;  %354 = vmatprep.subr.mxu1 %v472_v0 }
  0x3b   :  { %307 = vmatpush3.msra.mxu0 %v67_v28  ;;  %355 = vmatpush3.msra.mxu1 %v181_v38 }
  0x3c   :  { %308 = vmatprep.subr.mxu0 %v82_v30  ;;  %356 = vmatprep.subr.mxu1 %v472_v0 }
  0x3d   :  { %309 = vmatpush3.msra.mxu0 %v66_v31  ;;  %357 = vmatpush3.msra.mxu1 %v180_v41 }
  0x3e   :  { %310 = vmatprep.subr.mxu0 %v81_v33  ;;  %358 = vmatprep.subr.mxu1 %v472_v0 }
  0x3f   :  { %311 = vmatpush3.msra.mxu0 %v65_v34  ;;  %359 = vmatpush3.msra.mxu1 %v179_v45 }
  0x40   :  { %312 = vmatprep.subr.mxu0 %v80_v36  ;;  %360 = vmatprep.subr.mxu1 %v472_v0 }
  0x41   :  { %313 = vmatpush3.msra.mxu0 %v64_v37  ;;  %361 = vmatpush3.msra.mxu1 %v178_v46 }
  0x42   :  { %314 = vmatprep.subr.mxu0 %v79_v39  ;;  %362 = vmatprep.subr.mxu1 %v472_v0 }
  0x43   :  { %315 = vmatpush3.msra.mxu0 %v63_v40  ;;  %363 = vmatpush3.msra.mxu1 %v177_v47 }
  0x44   :  { %316 = vmatprep.subr.mxu0 %v78_v42  ;;  %364 = vmatprep.subr.mxu1 %v472_v0 }
  0x45   :  { %317 = vmatpush3.msra.mxu0 %v62_v43  ;;  %365 = vmatpush3.msra.mxu1 %v176_v48 }
  0x46   :  { %159 = vmatmul.mubr.f32.vlgmr.msra.gmra.mxu0 %v60_v44  ;;  %366 = vmatprep.subr.mxu1 %v472_v0 }
  0x47   :  { %367 = vmatpush3.msra.mxu1 %v175_v49 }
  0x48   :  { %368 = vmatprep.subr.mxu1 %v472_v0 }
  0x49   :  { %369 = vmatpush3.msra.mxu1 %v174_v50 }
 0x106   :  { %v318_v51 = vpop.f32.mrf.mxu0 }
 0x108   :  { %v319_v52 = vpop.f32.mrf.mxu0 }
 0x109   :  { %v320_v53 = vadd.f32 %v319_v52, %v318_v51 }
 0x10b   :  { %v164_v55 = vmul.f32 0.125, %v320_v53 }
 0x10d   :  { %v172_v56 = vadd.f32 %v284_v54, %v164_v55 }
 0x10f   :  { %v173_v57 = vmax.f32 %v172_v56, 0.0 }
 0x111   :  { %371 = vmatmul.mubr.f32.vlgmr.msra.gmra.mxu1 %v173_v57 }
 0x1d1   :  { %v263_v59 = vpop.f32.mrf.mxu1 }
 0x1d2   :  { %v264_v60 = vadd.f32 %v285_v58, %v263_v59 }
 0x1d3   :  { %v372_v61 = vpop.f32.mrf.mxu1 }
 0x1d4   :  { %267 = vst [vmem:[#allocation8] sm:$0xff] %v264_v60 }
 0x1d5   :  { %452 = shalt.err (!%p449_p5)
}
 0x1d6   :  { %277 = dma.vmem_to_hbm [thread:$0]  %s275_s12, 128, %s545_s5, [#allocation4]  }
 0x1d7   :  { %465 = dma.done.wait [#allocation4], 128  }
 0x1d8   :  { %466 = vsyncadd [#allocation4], 4294967168 }
 0x1d9   :  { %281 = vsyncpa [#allocation3], 1 }
 0x1da   :  { %282 = vsyncpa [#allocation6], 1 }
 0x1db   :  { %283 = vsyncpa [#allocation4], 1 }

</bundles_post_ra>
